<compile_context>
chip_gen: v7x
topology: tpu7x:2x2x1
jax: 0.10.0
libtpu: 0.0.40
codegen_flags: <defaults>
</compile_context>

<pallas_src>
import functools
import math

import jax
import jax.numpy as jnp
from jax.experimental import pallas as pl
from jax.experimental.pallas import tpu as pltpu

NUM_VALUES = 6   # embedding vocabulary per feature (Embedding(6, H))
NUM_FEATS = 3    # number of embedding tables in the ModuleList


def _bond_encoder_kernel(attr_ref, rhs_ref, out_ref, *, num_feats):
    # attr_ref: (TEq, g*F)     int32   folded edge-attribute tile
    # rhs_ref : (g*F*V, g*H)   float32 block-diagonal stacked embedding tables
    # out_ref : (TEq, g*H)     float32 lane-dense output tile
    attr = attr_ref[...]
    gf = attr.shape[1]                       # g * F
    k_fold = rhs_ref.shape[0]                # g * F * V
    n_vals = k_fold // gf                    # V (vocab per feature)
    k = num_feats * n_vals                   # K = F * V (per folded edge)

    # One small lane iota; the compares broadcast it (nothing (TE, K)-sized
    # is materialized besides the bool one-hot itself).
    iota = jax.lax.broadcasted_iota(jnp.int32, (1, k_fold), 1)

    # Column ranges are disjoint for valid attr values -> bool compares,
    # OR-reduce, one cast at the end.
    onehot = None
    for c in range(gf):                      # static unroll, g*F <= 24 iters
        off = (c // num_feats) * k + (c % num_feats) * n_vals
        hit = (attr[:, c:c + 1] + off) == iota           # (TEq, g*K) bool
        onehot = hit if onehot is None else jnp.logical_or(onehot, hit)

    # Single MXU pass: (TEq, g*K) @ (g*K, g*H) -> (TEq, g*H) lane-dense.
    out_ref[...] = jnp.dot(onehot.astype(jnp.float32), rhs_ref[...],
                           preferred_element_type=jnp.float32)


def _round_up(x, m):
    return ((x + m - 1) // m) * m


def _fold_factor(h, max_fold=8):
    """Edges folded per output row so the row width is a multiple of 128."""
    if h % 128 == 0:
        return 1
    g = 128 // math.gcd(h, 128)              # == lcm(h, 128) // h
    return g if g <= max_fold else 1


@functools.partial(jax.jit, static_argnames=("block_e",))
def bond_encoder(edge_attr, embeddings, *, block_e=512):
    """edge_attr: (E,) or (E, F) int; embeddings: (F, V, H) float32."""
    if edge_attr.ndim == 1:
        edge_attr = edge_attr[:, None]
    e, f = edge_attr.shape
    n_tables, n_vals, h = embeddings.shape
    assert f <= n_tables, (
        f"edge_attr has {f} feature columns but only {n_tables} tables")

    edge_attr = edge_attr.astype(jnp.int32)
    emb_flat = embeddings[:f].reshape(f * n_vals, h)         # (K, H)

    g = _fold_factor(h)
    e_pad = _round_up(e, g)
    if e_pad != e:
        # Pad with index 0 (valid) and slice the result below.  The slice adds
        # one output-sized copy -- keep E a multiple of g (<= 8) to avoid it.
        edge_attr = jnp.pad(edge_attr, ((0, e_pad - e), (0, 0)))
    eq = e_pad // g                                          # folded rows
    attr_folded = edge_attr.reshape(eq, g * f)               # free reshape
    # Block-diagonal RHS, built once wrapper-side; constant index_map below
    # means it is DMA'd into VMEM only once.
    rhs = emb_flat if g == 1 else jnp.kron(
        jnp.eye(g, dtype=emb_flat.dtype), emb_flat)          # (g*K, g*H)

    # Tile over folded rows: >= 2 balanced steps when there is enough work
    # (two v7x TensorCores), otherwise a single full-extent block.
    if eq > 8:
        cap = max(8, (block_e // g) // 8 * 8)
        beq = min(cap, _round_up(pl.cdiv(eq, 2), 8))
    else:
        beq = eq
    grid = (pl.cdiv(eq, beq),)

    out_folded = pl.pallas_call(
        functools.partial(_bond_encoder_kernel, num_feats=f),
        out_shape=jax.ShapeDtypeStruct((eq, g * h), jnp.float32),
        grid_spec=pltpu.PrefetchScalarGridSpec(
            num_scalar_prefetch=0,
            grid=grid,
            in_specs=[
                pl.BlockSpec((beq, g * f), lambda i: (i, 0)),
                pl.BlockSpec((g * f * n_vals, g * h), lambda i: (0, 0)),
            ],
            out_specs=pl.BlockSpec((beq, g * h), lambda i: (i, 0)),
        ),
        compiler_params=pltpu.CompilerParams(
            dimension_semantics=("parallel",)),
    )(attr_folded, rhs)

    out = out_folded.reshape(e_pad, h)       # row-major compatible, free
    return out if e_pad == e else out[:e]


def _reference(edge_attr, embeddings):
    if edge_attr.ndim == 1:
        edge_attr = edge_attr[:, None]
    out = 0
    for i in range(edge_attr.shape[1]):
        out = out + embeddings[i][edge_attr[:, i]]
    return out


if __name__ == "__main__":
    key = jax.random.PRNGKey(0)
    k_emb, k_attr = jax.random.split(key)

    E, H = 8, 32
    # deterministic "parameters" for the 3 Embedding(6, H) tables
    embeddings = jax.random.normal(k_emb, (NUM_FEATS, NUM_VALUES, H),
                                   dtype=jnp.float32)
    # synthetic edge attributes in [0, 6)
    edge_attr = jax.random.randint(k_attr, (E, NUM_FEATS), 0, NUM_VALUES,
                                   dtype=jnp.int32)

    out = bond_encoder(edge_attr, embeddings)
    out = jax.block_until_ready(out)

    ref = _reference(edge_attr, embeddings)
    assert out.shape == (E, H)
    assert jnp.allclose(out, ref, atol=1e-5, rtol=1e-5)
    print("KERNEL_OK")
</pallas_src>

<mosaic_0001>
module attributes {stable_mosaic.version = 11 : i64} {
  func.func @_bond_encoder_kernel(%arg0: i32, %arg1: memref<2x12xi32, #tpu.memory_space<vmem>>, %arg2: memref<72x128xf32, #tpu.memory_space<vmem>>, %arg3: memref<2x128xf32, #tpu.memory_space<vmem>>) attributes {dimension_semantics = [#tpu.dimension_semantics<parallel>], iteration_bounds = array<i64: 1>, scalar_prefetch = 0 : i64, scratch_operands = 0 : i64, tpu.core_type = #tpu.core_type<tc>, window_params = [{transform_indices = @transform_0, window_bounds = array<i64: 2, 12>}, {pipeline_mode = #tpu.pipeline_mode<synchronous>, transform_indices = @transform_1, window_bounds = array<i64: 72, 128>}, {transform_indices = @transform_2, window_bounds = array<i64: 2, 128>}]} {
    %c0 = arith.constant 0 : index
    %c0_0 = arith.constant 0 : index
    %0 = vector.load %arg1[%c0, %c0_0] : memref<2x12xi32, #tpu.memory_space<vmem>>, vector<2x12xi32>
    %1 = tpu.iota {dimensions = array<i32: 1>} : vector<1x72xi32>
    %2 = vector.extract_strided_slice %0 {offsets = [0, 0], sizes = [2, 1], strides = [1, 1]} : vector<2x12xi32> to vector<2x1xi32>
    %c0_i32 = arith.constant 0 : i32
    %3 = vector.broadcast %c0_i32 : i32 to vector<2x1xi32>
    %4 = arith.addi %2, %3 : vector<2x1xi32>
    %5 = vector.broadcast %4 : vector<2x1xi32> to vector<2x72xi32>
    %6 = vector.broadcast %1 : vector<1x72xi32> to vector<2x72xi32>
    %7 = arith.cmpi eq, %5, %6 : vector<2x72xi32>
    %8 = vector.extract_strided_slice %0 {offsets = [0, 1], sizes = [2, 1], strides = [1, 1]} : vector<2x12xi32> to vector<2x1xi32>
    %c6_i32 = arith.constant 6 : i32
    %9 = vector.broadcast %c6_i32 : i32 to vector<2x1xi32>
    %10 = arith.addi %8, %9 : vector<2x1xi32>
    %11 = vector.broadcast %10 : vector<2x1xi32> to vector<2x72xi32>
    %12 = vector.broadcast %1 : vector<1x72xi32> to vector<2x72xi32>
    %13 = arith.cmpi eq, %11, %12 : vector<2x72xi32>
    %14 = arith.ori %7, %13 : vector<2x72xi1>
    %15 = vector.extract_strided_slice %0 {offsets = [0, 2], sizes = [2, 1], strides = [1, 1]} : vector<2x12xi32> to vector<2x1xi32>
    %c12_i32 = arith.constant 12 : i32
    %16 = vector.broadcast %c12_i32 : i32 to vector<2x1xi32>
    %17 = arith.addi %15, %16 : vector<2x1xi32>
    %18 = vector.broadcast %17 : vector<2x1xi32> to vector<2x72xi32>
    %19 = vector.broadcast %1 : vector<1x72xi32> to vector<2x72xi32>
    %20 = arith.cmpi eq, %18, %19 : vector<2x72xi32>
    %21 = arith.ori %14, %20 : vector<2x72xi1>
    %22 = vector.extract_strided_slice %0 {offsets = [0, 3], sizes = [2, 1], strides = [1, 1]} : vector<2x12xi32> to vector<2x1xi32>
    %c18_i32 = arith.constant 18 : i32
    %23 = vector.broadcast %c18_i32 : i32 to vector<2x1xi32>
    %24 = arith.addi %22, %23 : vector<2x1xi32>
    %25 = vector.broadcast %24 : vector<2x1xi32> to vector<2x72xi32>
    %26 = vector.broadcast %1 : vector<1x72xi32> to vector<2x72xi32>
    %27 = arith.cmpi eq, %25, %26 : vector<2x72xi32>
    %28 = arith.ori %21, %27 : vector<2x72xi1>
    %29 = vector.extract_strided_slice %0 {offsets = [0, 4], sizes = [2, 1], strides = [1, 1]} : vector<2x12xi32> to vector<2x1xi32>
    %c24_i32 = arith.constant 24 : i32
    %30 = vector.broadcast %c24_i32 : i32 to vector<2x1xi32>
    %31 = arith.addi %29, %30 : vector<2x1xi32>
    %32 = vector.broadcast %31 : vector<2x1xi32> to vector<2x72xi32>
    %33 = vector.broadcast %1 : vector<1x72xi32> to vector<2x72xi32>
    %34 = arith.cmpi eq, %32, %33 : vector<2x72xi32>
    %35 = arith.ori %28, %34 : vector<2x72xi1>
    %36 = vector.extract_strided_slice %0 {offsets = [0, 5], sizes = [2, 1], strides = [1, 1]} : vector<2x12xi32> to vector<2x1xi32>
    %c30_i32 = arith.constant 30 : i32
    %37 = vector.broadcast %c30_i32 : i32 to vector<2x1xi32>
    %38 = arith.addi %36, %37 : vector<2x1xi32>
    %39 = vector.broadcast %38 : vector<2x1xi32> to vector<2x72xi32>
    %40 = vector.broadcast %1 : vector<1x72xi32> to vector<2x72xi32>
    %41 = arith.cmpi eq, %39, %40 : vector<2x72xi32>
    %42 = arith.ori %35, %41 : vector<2x72xi1>
    %43 = vector.extract_strided_slice %0 {offsets = [0, 6], sizes = [2, 1], strides = [1, 1]} : vector<2x12xi32> to vector<2x1xi32>
    %c36_i32 = arith.constant 36 : i32
    %44 = vector.broadcast %c36_i32 : i32 to vector<2x1xi32>
    %45 = arith.addi %43, %44 : vector<2x1xi32>
    %46 = vector.broadcast %45 : vector<2x1xi32> to vector<2x72xi32>
    %47 = vector.broadcast %1 : vector<1x72xi32> to vector<2x72xi32>
    %48 = arith.cmpi eq, %46, %47 : vector<2x72xi32>
    %49 = arith.ori %42, %48 : vector<2x72xi1>
    %50 = vector.extract_strided_slice %0 {offsets = [0, 7], sizes = [2, 1], strides = [1, 1]} : vector<2x12xi32> to vector<2x1xi32>
    %c42_i32 = arith.constant 42 : i32
    %51 = vector.broadcast %c42_i32 : i32 to vector<2x1xi32>
    %52 = arith.addi %50, %51 : vector<2x1xi32>
    %53 = vector.broadcast %52 : vector<2x1xi32> to vector<2x72xi32>
    %54 = vector.broadcast %1 : vector<1x72xi32> to vector<2x72xi32>
    %55 = arith.cmpi eq, %53, %54 : vector<2x72xi32>
    %56 = arith.ori %49, %55 : vector<2x72xi1>
    %57 = vector.extract_strided_slice %0 {offsets = [0, 8], sizes = [2, 1], strides = [1, 1]} : vector<2x12xi32> to vector<2x1xi32>
    %c48_i32 = arith.constant 48 : i32
    %58 = vector.broadcast %c48_i32 : i32 to vector<2x1xi32>
    %59 = arith.addi %57, %58 : vector<2x1xi32>
    %60 = vector.broadcast %59 : vector<2x1xi32> to vector<2x72xi32>
    %61 = vector.broadcast %1 : vector<1x72xi32> to vector<2x72xi32>
    %62 = arith.cmpi eq, %60, %61 : vector<2x72xi32>
    %63 = arith.ori %56, %62 : vector<2x72xi1>
    %64 = vector.extract_strided_slice %0 {offsets = [0, 9], sizes = [2, 1], strides = [1, 1]} : vector<2x12xi32> to vector<2x1xi32>
    %c54_i32 = arith.constant 54 : i32
    %65 = vector.broadcast %c54_i32 : i32 to vector<2x1xi32>
    %66 = arith.addi %64, %65 : vector<2x1xi32>
    %67 = vector.broadcast %66 : vector<2x1xi32> to vector<2x72xi32>
    %68 = vector.broadcast %1 : vector<1x72xi32> to vector<2x72xi32>
    %69 = arith.cmpi eq, %67, %68 : vector<2x72xi32>
    %70 = arith.ori %63, %69 : vector<2x72xi1>
    %71 = vector.extract_strided_slice %0 {offsets = [0, 10], sizes = [2, 1], strides = [1, 1]} : vector<2x12xi32> to vector<2x1xi32>
    %c60_i32 = arith.constant 60 : i32
    %72 = vector.broadcast %c60_i32 : i32 to vector<2x1xi32>
    %73 = arith.addi %71, %72 : vector<2x1xi32>
    %74 = vector.broadcast %73 : vector<2x1xi32> to vector<2x72xi32>
    %75 = vector.broadcast %1 : vector<1x72xi32> to vector<2x72xi32>
    %76 = arith.cmpi eq, %74, %75 : vector<2x72xi32>
    %77 = arith.ori %70, %76 : vector<2x72xi1>
    %78 = vector.extract_strided_slice %0 {offsets = [0, 11], sizes = [2, 1], strides = [1, 1]} : vector<2x12xi32> to vector<2x1xi32>
    %c66_i32 = arith.constant 66 : i32
    %79 = vector.broadcast %c66_i32 : i32 to vector<2x1xi32>
    %80 = arith.addi %78, %79 : vector<2x1xi32>
    %81 = vector.broadcast %80 : vector<2x1xi32> to vector<2x72xi32>
    %82 = vector.broadcast %1 : vector<1x72xi32> to vector<2x72xi32>
    %83 = arith.cmpi eq, %81, %82 : vector<2x72xi32>
    %84 = arith.ori %77, %83 : vector<2x72xi1>
    %85 = arith.extui %84 : vector<2x72xi1> to vector<2x72xi32>
    %86 = arith.sitofp %85 : vector<2x72xi32> to vector<2x72xf32>
    %c0_1 = arith.constant 0 : index
    %c0_2 = arith.constant 0 : index
    %87 = vector.load %arg2[%c0_1, %c0_2] : memref<72x128xf32, #tpu.memory_space<vmem>>, vector<72x128xf32>
    %cst = arith.constant dense<0.000000e+00> : vector<2x128xf32>
    %88 = tpu.matmul %86, %87, %cst {dimension_numbers = #tpu.dot_dimension_numbers<[1], [0], [0], [1], [0, 0, 1, 1], [], []>} : vector<2x72xf32>, vector<72x128xf32>, vector<2x128xf32> -> vector<2x128xf32>
    %c0_3 = arith.constant 0 : index
    %c0_4 = arith.constant 0 : index
    %89 = vector.load %arg3[%c0_3, %c0_4] : memref<2x128xf32, #tpu.memory_space<vmem>>, vector<2x128xf32>
    tpu.vector_store %arg3[%c0_3, %c0_4], %88 {strides = array<i32>} : memref<2x128xf32, #tpu.memory_space<vmem>>, vector<2x128xf32>,
    return
  }
  func.func @transform_0(%arg0: i32) -> (i32, i32) {
    %c0_i32 = arith.constant 0 : i32
    %c0_i32_0 = arith.constant 0 : i32
    return %arg0, %c0_i32 : i32, i32
  }
  func.func @transform_1(%arg0: i32) -> (i32, i32) {
    %c0_i32 = arith.constant 0 : i32
    %c0_i32_0 = arith.constant 0 : i32
    %c0_i32_1 = arith.constant 0 : i32
    return %c0_i32, %c0_i32_0 : i32, i32
  }
  func.func @transform_2(%arg0: i32) -> (i32, i32) {
    %c0_i32 = arith.constant 0 : i32
    %c0_i32_0 = arith.constant 0 : i32
    return %arg0, %c0_i32 : i32, i32
  }
}

</mosaic_0001>

<bundles_post_ra>
// kernel: mul.4
= control target key start
LH: loop header
LB: loop body
LE: loop exit
PB: predicated region body
PF: predicated region fallthrough
CT: control target
= control target key end

     0   :  { %2 = vsyncpa [#allocation1], 0  ;;  %s53_s6 = smov [#allocation0]   ;;  %s85_s0 = inlined_call_operand.hbm [shape: f32[3,6,32], index: 0, kind: input, shape index: {}]   ;;  %s86_s1 = inlined_call_operand.vmem [shape: f32[18,32], index: 1, kind: output, shape index: {}]  }
   0x1   :  { %s7_s7 = sshll.u32 %s53_s6, 4  ;;  %s29_s10 = scalar_lea.hbm %s85_s0, 384  ;;  %s8_s7 = int_to_ptr.vmem [resolvable:$true] %s7_s7 }
   0x2   :  { %p30_p0 = scmp.ne.s32.totalorder %s85_s0, %s29_s10  ;;  %p33_p1 = scmp.lt.u32.totalorder %s29_s10, %s85_s0 }
   0x4   :  { %p35_p2 = pnand %p33_p1, %p30_p0 }
   0x6   :  { %38 = shalt.err (!%p35_p2)
}
   0x7   :  { %s39_s15 = scalar_lea.vmem %s8_s7, 384  ;;  %p44_p4 = scmp.lt.s32.totalorder %s8_s7, %s8_s7 }
   0x8   :  { %p40_p3 = scmp.ne.s32.totalorder %s8_s7, %s39_s15  ;;  %p45_p5 = scmp.lt.s32.totalorder %s39_s15, %s39_s15 }
   0xa   :  { %p46_p6 = por %p45_p5, %p44_p4 }
   0xc   :  { %p47_p7 = pnand %p46_p6, %p40_p3 }
   0xe   :  { %50 = shalt.err (!%p47_p7)
}
   0xf   :  { %10 = dma.hbm_to_vmem [thread:$0]  %s85_s0, 384, %s8_s7, [#allocation1]  }
  0x10   :  { %51 = dma.done.wait [#allocation1], 384  }
  0x11   :  { %52 = vsyncadd [#allocation1], 4294966912  ;;  %vm13_vm0 = vcmask 261120   ;;  %v12_v0 = vld [vmem:[#allocation0] sm:$0x3f]  }
  0x12   :  { %v16_v1 = vld [vmem:[#allocation0 + $0x8] sm:$0x3f]   ;;  %v21_v2 = vld [vmem:[#allocation0 + $0x10] sm:$0x3f]   ;;  %14 = vst.msk [vmem:[%s86_s1] sm:$0x3f] %vm13_vm0, %v12_v0  }
  0x13   :  { %26 = vst.msk [vmem:[%s86_s1 + $0x6] sm:$0x3f] %vm13_vm0, %v16_v1   ;;  %27 = vst.msk [vmem:[%s86_s1 + $0xc] sm:$0x3f] %vm13_vm0, %v21_v2  }
  0x14   :  { %25 = vsyncpa [#allocation1], 1 }

// kernel: bond_encoder.1
= control target key start
LH: loop header
LB: loop body
LE: loop exit
PB: predicated region body
PF: predicated region fallthrough
CT: control target
= control target key end

     0   :  { %v246_v0 = vmov 0   ;;  %v247_v2 = vmov 2   ;;  %v248_v6 = vmov 1   ;;  %v249_v7 = vmov 3   ;;  %s309_s0 = inlined_call_operand.vmem [shape: s32[2,12], index: 0, kind: input, shape index: {}]   ;;  %s310_s1 = inlined_call_operand.vmem [shape: f32[72,128], index: 1, kind: input, shape index: {}]   ;;  %s311_s2 = inlined_call_operand.vmem [shape: f32[2,128], index: 2, kind: output, shape index: {}]  }
   0x1   :  { %234 = vset.pattern.permute.xlu0 %v246_v0  ;;  %v11_v1 = vld [vmem:[%s309_s0] sm:$0x3]  ;;  %236 = vset.pattern.permute.xlu1 %v247_v2  ;;  %v250_v10 = vmov 5   ;;  %v251_v11 = vmov 4   ;;  %v252_v14 = vmov 8   ;;  %v253_v15 = vmov 6  }
   0x2   :  { %15 = vperm.xlu0 %234, %v11_v1   ;;  %v24_v3 = vadd.s32 12, %v11_v1  ;;  %v18_v4 = vadd.s32 6, %v11_v1  ;;  %v30_v5 = vadd.s32 18, %v11_v1  ;;  %v42_v8 = vadd.s32 30, %v11_v1  ;;  %v86_v17 = vld [vmem:[%s310_s1] sm:$0xff]  ;;  %v87_v18 = vld [vmem:[%s310_s1 + $0x8] sm:$0xff] }
   0x3   :  { %v36_v9 = vadd.s32 24, %v11_v1  ;;  %v60_v12 = vadd.s32 48, %v11_v1  ;;  %v48_v13 = vadd.s32 36, %v11_v1  ;;  %v78_v16 = vadd.s32 66, %v11_v1  ;;  %v88_v23 = vld [vmem:[%s310_s1 + $0x10] sm:$0xff]  ;;  %v89_v24 = vld [vmem:[%s310_s1 + $0x18] sm:$0xff] }
   0x4   :  { %26 = vperm.xlu1 %236, %v24_v3   ;;  %v208_v19 = vpack.c.bf16 %v87_v18, %v86_v17  ;;  %v54_v20 = vadd.s32 42, %v11_v1  ;;  %v254_v21 = vmov 0.0|0.0   ;;  %v255_v22 = vmov 11   ;;  %v90_v28 = vld [vmem:[%s310_s1 + $0x20] sm:$0xff]  ;;  %v91_v29 = vld [vmem:[%s310_s1 + $0x28] sm:$0xff]  ;;  %v92_v33 = vld [vmem:[%s310_s1 + $0x30] sm:$0xff] }
   0x5   :  { %207 = vmatprep.subr.bf16.mxu0 %v254_v21  ;;  %v256_v25 = vmov 7   ;;  %v211_v26 = vpack.c.bf16 %v89_v24, %v88_v23  ;;  %v66_v27 = vadd.s32 54, %v11_v1  ;;  %v214_v30 = vpack.c.bf16 %v91_v29, %v90_v28  ;;  %v93_v34 = vld [vmem:[%s310_s1 + $0x38] sm:$0xff]  ;;  %v94_v38 = vld [vmem:[%s310_s1 + $0x40] sm:$0xff] }
   0x6   :  { %235 = vset.pattern.permute.xlu0 %v248_v6  ;;  %209 = vmatpush3.bf16.msra.mxu0 %v208_v19  ;;  %v257_v31 = vmov 9   ;;  %v72_v32 = vadd.s32 60, %v11_v1  ;;  %v217_v35 = vpack.c.bf16 %v93_v34, %v92_v33  ;;  %v258_v36 = vmov 10  }
   0x7   :  { %20 = vperm.xlu0 %235, %v18_v4   ;;  %210 = vmatprep.subr.bf16.mxu0 %v254_v21  ;;  %v259_v37 = vmov 0.0   ;;  %vm260_vm0 = vmmov 0   ;;  %v12_v42 = vlaneseq }
   0x8   :  { %237 = vset.pattern.permute.xlu1 %v249_v7  ;;  %204 = vmatprep.mubr.msk.f32.mxu0 %vm260_vm0, %v259_v37 }
   0x9   :  { %32 = vperm.xlu1 %237, %v30_v5   ;;  %v13_v44 = vand.u32 127, %v12_v42 }
   0xa   :  { %212 = vmatpush3.bf16.msra.mxu0 %v211_v26 }
   0xb   :  { %239 = vset.pattern.permute.xlu0 %v250_v10  ;;  %213 = vmatprep.subr.bf16.mxu0 %v254_v21 }
   0xc   :  { %44 = vperm.xlu0 %239, %v42_v8  }
   0xd   :  { %238 = vset.pattern.permute.xlu1 %v251_v11 }
   0xe   :  { %38 = vperm.xlu1 %238, %v36_v9   ;;  %215 = vmatpush3.bf16.msra.mxu0 %v214_v30 }
   0xf   :  { %216 = vmatprep.subr.bf16.mxu0 %v254_v21 }
  0x10   :  { %242 = vset.pattern.permute.xlu0 %v252_v14 }
  0x11   :  { %62 = vperm.xlu0 %242, %v60_v12  }
  0x12   :  { %240 = vset.pattern.permute.xlu1 %v253_v15  ;;  %218 = vmatpush3.bf16.msra.mxu0 %v217_v35 }
  0x13   :  { %50 = vperm.xlu1 %240, %v48_v13   ;;  %202 = vmatprep.subr.mxu0 %v259_v37 }
  0x15   :  { %245 = vset.pattern.permute.xlu0 %v255_v22 }
  0x16   :  { %80 = vperm.xlu0 %245, %v78_v16   ;;  %203 = vmatpush3.msra.mxu0 %v94_v38 }
  0x17   :  { %241 = vset.pattern.permute.xlu1 %v256_v25 }
  0x18   :  { %56 = vperm.xlu1 %241, %v54_v20  }
  0x1c   :  { %243 = vset.pattern.permute.xlu1 %v257_v31 }
  0x1d   :  { %68 = vperm.xlu1 %243, %v66_v27  }
  0x21   :  { %244 = vset.pattern.permute.xlu1 %v258_v36 }
  0x22   :  { %74 = vperm.xlu1 %244, %v72_v32  }
  0x81   :  { %v16_v40 = vpop.permute.xlu0 %15 }
  0x82   :  { %vm17_vm1 = vcmp.eq.s32.totalorder %v16_v40, %v13_v44 }
  0x83   :  { %v27_v39 = vpop.permute.xlu1 %26 }
  0x84   :  { %vm28_vm4 = vcmp.eq.s32.totalorder %v27_v39, %v13_v44 }
  0x86   :  { %v21_v43 = vpop.permute.xlu0 %20 }
  0x87   :  { %vm22_vm2 = vcmp.eq.s32.totalorder %v21_v43, %v13_v44 }
  0x88   :  { %v33_v41 = vpop.permute.xlu1 %32  ;;  %vm23_vm3 = vmor %vm17_vm1, %vm22_vm2 }
  0x89   :  { %vm29_vm5 = vmor %vm23_vm3, %vm28_vm4  ;;  %vm34_vm6 = vcmp.eq.s32.totalorder %v33_v41, %v13_v44 }
  0x8a   :  { %vm35_vm8 = vmor %vm29_vm5, %vm34_vm6 }
  0x8b   :  { %v45_v47 = vpop.permute.xlu0 %44 }
  0x8c   :  { %vm46_vm10 = vcmp.eq.s32.totalorder %v45_v47, %v13_v44 }
  0x8d   :  { %v39_v45 = vpop.permute.xlu1 %38 }
  0x8e   :  { %vm40_vm7 = vcmp.eq.s32.totalorder %v39_v45, %v13_v44 }
  0x8f   :  { %vm41_vm9 = vmor %vm35_vm8, %vm40_vm7  ;;  %vm95_vm7 = vcmask 588800  }
  0x90   :  { %v63_v49 = vpop.permute.xlu0 %62  ;;  %vm47_vm13 = vmor %vm41_vm9, %vm46_vm10 }
  0x91   :  { %vm64_vm0 = vcmp.eq.s32.totalorder %v63_v49, %v13_v44 }
  0x92   :  { %v51_v46 = vpop.permute.xlu1 %50 }
  0x93   :  { %vm52_vm11 = vcmp.eq.s32.totalorder %v51_v46, %v13_v44 }
  0x94   :  { %vm53_vm14 = vmor %vm47_vm13, %vm52_vm11 }
  0x95   :  { %v81_v51 = vpop.permute.xlu0 %80 }
  0x96   :  { %vm82_vm3 = vcmp.eq.s32.totalorder %v81_v51, %v13_v44 }
  0x97   :  { %v57_v48 = vpop.permute.xlu1 %56 }
  0x98   :  { %vm58_vm12 = vcmp.eq.s32.totalorder %v57_v48, %v13_v44 }
  0x99   :  { %vm59_vm15 = vmor %vm53_vm14, %vm58_vm12 }
  0x9a   :  { %vm65_vm2 = vmor %vm59_vm15, %vm64_vm0 }
  0x9c   :  { %v69_v50 = vpop.permute.xlu1 %68 }
  0x9d   :  { %vm70_vm1 = vcmp.eq.s32.totalorder %v69_v50, %v13_v44 }
  0x9e   :  { %vm71_vm4 = vmor %vm65_vm2, %vm70_vm1 }
  0xa1   :  { %v75_v52 = vpop.permute.xlu1 %74 }
  0xa2   :  { %vm76_vm5 = vcmp.eq.s32.totalorder %v75_v52, %v13_v44 }
  0xa3   :  { %vm77_vm6 = vmor %vm71_vm4, %vm76_vm5 }
  0xa4   :  { %vm83_vm8 = vmor %vm77_vm6, %vm82_vm3 }
  0xa5   :  { %v174_v53 = vsel %vm83_vm8, 1.0, %v259_v37 }
  0xa6   :  { %205 = vmatmul.mubr.msk.f32.vlgmr.msra.gmra.mrb[0].mxu0 %vm95_vm7, %v174_v53 }
 0x179   :  { %v165_v54 = vpop.f32.mrb[0].mxu0 }
 0x17a   :  { %169 = vst [vmem:[%s311_s2] sm:$0x3] %v165_v54  ;;  %v206_v55 = vpop.f32.mrb[1].mxu0 }

</bundles_post_ra>
